<compile_context>
chip_gen: v5e
topology: v5e:2x2
jax: 0.10.0
libtpu: 0.0.40
codegen_flags: <defaults>
</compile_context>

<pallas_src>
import functools
import math

import jax
import jax.numpy as jnp
from jax.experimental import pallas as pl
from jax.experimental.pallas import tpu as pltpu


def _encoder_kernel(z_ref, wqkv_ref, bqkv_ref, wmsa_ref, bmsa_ref,
                    gamma_ref, beta_ref, o_ref, z_carry,
                    *, h, D, N, block_b):
    """One (batch-block, layer) grid step.

    Blocks seen by the kernel:
      z_ref   : (block_b*N, D)      residual-stream rows (consumed only at layer 0)
      wqkv_ref: (1, D, 3D)   bf16   columns pre-permuted to [Q heads | K heads | V heads]
      bqkv_ref: (1, 1, 3D)   f32
      wmsa_ref: (1, D, D)    bf16
      bmsa_ref: (1, 1, D)    f32
      gamma_ref / beta_ref: (1, 1, D) f32
      o_ref   : (block_b*N, D)
      z_carry : (block_b*N, D) f32 VMEM scratch carrying activations across layers
    """
    D_h = D // h
    l = pl.program_id(1)
    inv_sqrt_dh = 1.0 / math.sqrt(D_h)

    # Layer 0: load the residual stream into the f32 carry.
    @pl.when(l == 0)
    def _():
        z_carry[...] = z_ref[...].astype(jnp.float32)

    z = z_carry[...]                                       # (M, D) f32

    # ---- LayerNorm (f32 elementwise; eps = nn.LayerNorm default 1e-5) ----
    mean = jnp.mean(z, axis=-1, keepdims=True)
    var = jnp.mean((z - mean) ** 2, axis=-1, keepdims=True)
    z1 = (z - mean) * jax.lax.rsqrt(var + 1e-5)
    z1 = z1 * gamma_ref[0] + beta_ref[0]                   # (M, D)

    # ---- QKV projection: bf16 inputs, f32 MXU accumulation ----
    qkv = jnp.dot(z1.astype(jnp.bfloat16), wqkv_ref[0],
                  preferred_element_type=jnp.float32)
    qkv = qkv + bqkv_ref[0]                                # (M, 3D) f32

    # Lane-contiguous Q / K / V slabs (columns pre-permuted on the host).
    q_all = qkv[:, 0 * D:1 * D]
    k_all = qkv[:, 1 * D:2 * D]
    v_all = qkv[:, 2 * D:3 * D]

    # ---- attention: static loop over (batch element, head) of plain 2-D dots ----
    rows = []
    for b in range(block_b):
        r0 = b * N
        head_outs = []
        for hd in range(h):
            c0 = hd * D_h
            q = q_all[r0:r0 + N, c0:c0 + D_h].astype(jnp.bfloat16)
            k = k_all[r0:r0 + N, c0:c0 + D_h].astype(jnp.bfloat16)
            v = v_all[r0:r0 + N, c0:c0 + D_h].astype(jnp.bfloat16)
            # scores = q @ k^T (contract the D_h axis of both operands)
            s = jax.lax.dot_general(q, k, (((1,), (1,)), ((), ())),
                                    preferred_element_type=jnp.float32)
            s = s * inv_sqrt_dh
            s_max = jnp.max(s, axis=-1, keepdims=True)
            p = jnp.exp(s - s_max)
            denom = jnp.sum(p, axis=-1, keepdims=True)
            p = p * pl.reciprocal(denom, approx=True)      # EUP reciprocal (free slot)
            head_outs.append(jnp.dot(p.astype(jnp.bfloat16), v,
                                     preferred_element_type=jnp.float32))
        rows.append(jnp.concatenate(head_outs, axis=-1))   # (N, D)
    attn = jnp.concatenate(rows, axis=0)                   # (M, D)

    # ---- output projection + residual ----
    msa = jnp.dot(attn.astype(jnp.bfloat16), wmsa_ref[0],
                  preferred_element_type=jnp.float32) + bmsa_ref[0]
    z_new = z + msa

    z_carry[...] = z_new

    @pl.when(l == pl.num_programs(1) - 1)
    def _():
        o_ref[...] = z_new.astype(o_ref.dtype)


def simplified_transformer_encoder(z, params, *, h, block_b=None):
    """z: (B, N, D) float32. params: dict of stacked per-layer parameters
    ('wqkv' (L,D,3D), 'bqkv' (L,3D), 'wmsa' (L,D,D), 'bmsa' (L,D), 'gamma', 'beta'),
    weights stored in the torch (transposed) layout with per-head-interleaved QKV columns."""
    B, N, D = z.shape
    assert D % h == 0, "D must be divisible by h"
    D_h = D // h
    wqkv = params['wqkv']
    bqkv = params['bqkv']
    wmsa = params['wmsa']
    bmsa = params['bmsa']
    gamma = params['gamma']
    beta = params['beta']
    L = wqkv.shape[0]

    # Fold batch elements into one block so the MXU M-dimension of the projections
    # is reasonably filled when N is small (and fewer grid steps are paid).
    if block_b is None:
        target = max(1, -(-128 // N))                      # ceil(128 / N)
        block_b = 1
        for cand in range(min(B, target), 0, -1):
            if B % cand == 0:
                block_b = cand
                break
    if (block_b * N) % 8 != 0:                             # keep the block sublane-legal
        block_b = B                                        # full-array block is always legal
    assert B % block_b == 0
    M = block_b * N

    # Re-order QKV output columns from torch's per-head [q|k|v] interleave to
    # [all Q heads | all K heads | all V heads] so the kernel slices lane-contiguous
    # slabs; store the matmul weights in bf16 (MXU-native, halves DMA/VMEM bytes).
    wqkv_k = (wqkv.reshape(L, D, h, 3, D_h).transpose(0, 1, 3, 2, 4)
                  .reshape(L, D, 3 * D)).astype(jnp.bfloat16)
    bqkv_k = (bqkv.reshape(L, h, 3, D_h).transpose(0, 2, 1, 3)
                  .reshape(L, 1, 3 * D)).astype(jnp.float32)
    wmsa_k = wmsa.astype(jnp.bfloat16)
    bmsa_k = bmsa.reshape(L, 1, D).astype(jnp.float32)
    gamma_k = gamma.reshape(L, 1, D).astype(jnp.float32)
    beta_k = beta.reshape(L, 1, D).astype(jnp.float32)

    z2 = z.reshape(B * N, D)                               # lane-dense (rows, D) slab

    # VMEM budget: one layer of weights (double-buffered) + activation blocks + scratch.
    w_bytes = (D * 3 * D + D * D) * 2                      # bf16 weight matrices
    vec_bytes = 6 * D * 4                                  # biases + LN params
    io_bytes = 2 * M * D * z.dtype.itemsize                # z in + out block
    work_bytes = M * (4 * D) * 4 + 2 * N * N * 4 + M * D * 4
    vmem_need = 2 * (w_bytes + vec_bytes + io_bytes) + work_bytes
    vmem_limit = int(max(16 << 20, min(2 * vmem_need + (4 << 20), 64 << 20)))

    kernel = functools.partial(_encoder_kernel, h=h, D=D, N=N, block_b=block_b)

    out = pl.pallas_call(
        kernel,
        out_shape=jax.ShapeDtypeStruct((B * N, D), z.dtype),
        grid_spec=pltpu.PrefetchScalarGridSpec(
            num_scalar_prefetch=0,
            grid=(B // block_b, L),                        # layer axis innermost
            in_specs=[
                pl.BlockSpec((M, D), lambda b, l: (b, 0)),            # z (flattened)
                pl.BlockSpec((1, D, 3 * D), lambda b, l: (l, 0, 0)),  # wqkv (per layer)
                pl.BlockSpec((1, 1, 3 * D), lambda b, l: (l, 0, 0)),  # bqkv
                pl.BlockSpec((1, D, D), lambda b, l: (l, 0, 0)),      # wmsa
                pl.BlockSpec((1, 1, D), lambda b, l: (l, 0, 0)),      # bmsa
                pl.BlockSpec((1, 1, D), lambda b, l: (l, 0, 0)),      # gamma
                pl.BlockSpec((1, 1, D), lambda b, l: (l, 0, 0)),      # beta
            ],
            out_specs=pl.BlockSpec((M, D), lambda b, l: (b, 0)),
            scratch_shapes=[pltpu.VMEM((M, D), jnp.float32)],         # layer carry
        ),
        compiler_params=pltpu.CompilerParams(
            dimension_semantics=("parallel", "arbitrary"),
            vmem_limit_bytes=vmem_limit),
    )(z2, wqkv_k, bqkv_k, wmsa_k, bmsa_k, gamma_k, beta_k)
    return out.reshape(B, N, D)


def init_params(key, L, D, h):
    """Deterministic parameter init (shapes match the PyTorch module)."""
    keys = jax.random.split(key, 4 * L)
    D_h = D // h
    D_out = 3 * D_h * h
    bound = 1.0 / math.sqrt(D)
    wqkv_list, bqkv_list, wmsa_list, bmsa_list = [], [], [], []
    for l in range(L):
        k0, k1, k2, k3 = keys[4 * l:4 * l + 4]
        # torch Linear weight is (out, in); we store the transpose (in, out)
        w_qkv = jax.random.uniform(k0, (D_out, D), jnp.float32, -bound, bound)
        b_qkv = jax.random.uniform(k1, (D_out,), jnp.float32, -bound, bound)
        w_msa = jax.random.uniform(k2, (D, D), jnp.float32, -bound, bound)
        b_msa = jax.random.uniform(k3, (D,), jnp.float32, -bound, bound)
        # round matmul weights to bf16-representable values so the bf16 kernel and
        # the f32 reference use identical parameter values
        w_qkv = w_qkv.astype(jnp.bfloat16).astype(jnp.float32)
        w_msa = w_msa.astype(jnp.bfloat16).astype(jnp.float32)
        wqkv_list.append(w_qkv.T)   # (D, 3D)
        bqkv_list.append(b_qkv)
        wmsa_list.append(w_msa.T)   # (D, D)
        bmsa_list.append(b_msa)
    return {
        'wqkv': jnp.stack(wqkv_list),
        'bqkv': jnp.stack(bqkv_list),
        'wmsa': jnp.stack(wmsa_list),
        'bmsa': jnp.stack(bmsa_list),
        'gamma': jnp.ones((L, D), jnp.float32),   # nn.LayerNorm default
        'beta': jnp.zeros((L, D), jnp.float32),
    }


def reference_forward(z, params, *, h):
    """Pure-JAX f32 reference of the PyTorch forward (sanity check)."""
    L, D, _ = params['wqkv'].shape
    D_h = D // h
    B, N, _ = z.shape
    for l in range(L):
        mean = jnp.mean(z, axis=-1, keepdims=True)
        var = jnp.mean((z - mean) ** 2, axis=-1, keepdims=True)
        z1 = (z - mean) / jnp.sqrt(var + 1e-5) * params['gamma'][l] + params['beta'][l]
        qkv = z1 @ params['wqkv'][l] + params['bqkv'][l]
        qkv = qkv.reshape(B, N, h, 3 * D_h).transpose(0, 2, 1, 3)
        q, k, v = jnp.split(qkv, 3, axis=-1)
        s = jnp.einsum('bhnd,bhmd->bhnm', q, k) / math.sqrt(D_h)
        p = jax.nn.softmax(s, axis=-1)
        a = jnp.einsum('bhnm,bhmd->bhnd', p, v)
        a = a.transpose(0, 2, 1, 3).reshape(B, N, D)
        z = z + a @ params['wmsa'][l] + params['bmsa'][l]
    return z


if __name__ == "__main__":
    B, N, D, h, L = 2, 8, 32, 4, 2
    key = jax.random.PRNGKey(0)
    k_z, k_p = jax.random.split(key)
    z = jax.random.normal(k_z, (B, N, D), jnp.float32)
    params = init_params(k_p, L, D, h)

    out = simplified_transformer_encoder(z, params, h=h)
    out = jax.block_until_ready(out)

    ref = reference_forward(z, params, h=h)
    assert out.shape == (B, N, D)
    # bf16 MXU matmuls + approximate softmax reciprocal vs. the pure-f32 reference
    assert jnp.allclose(out, ref, atol=5e-2, rtol=5e-2), \
        f"max abs diff {jnp.max(jnp.abs(out - ref))}"
    print("KERNEL_OK")
</pallas_src>

<mosaic_0001>
module attributes {stable_mosaic.version = 11 : i64} {
  func.func @_encoder_kernel(%arg0: i32, %arg1: i32, %arg2: memref<16x32xf32, #tpu.memory_space<vmem>>, %arg3: memref<1x32x96xbf16, #tpu.memory_space<vmem>>, %arg4: memref<1x1x96xf32, #tpu.memory_space<vmem>>, %arg5: memref<1x32x32xbf16, #tpu.memory_space<vmem>>, %arg6: memref<1x1x32xf32, #tpu.memory_space<vmem>>, %arg7: memref<1x1x32xf32, #tpu.memory_space<vmem>>, %arg8: memref<1x1x32xf32, #tpu.memory_space<vmem>>, %arg9: memref<16x32xf32, #tpu.memory_space<vmem>>, %arg10: memref<16x32xf32, #tpu.memory_space<vmem>>) attributes {dimension_semantics = [#tpu.dimension_semantics<parallel>, #tpu.dimension_semantics<arbitrary>], iteration_bounds = array<i64: 1, 2>, scalar_prefetch = 0 : i64, scratch_operands = 1 : i64, tpu.core_type = #tpu.core_type<tc>, window_params = [{transform_indices = @transform_0, window_bounds = array<i64: 16, 32>}, {transform_indices = @transform_1, window_bounds = array<i64: 1, 32, 96>}, {transform_indices = @transform_2, window_bounds = array<i64: 1, 1, 96>}, {transform_indices = @transform_3, window_bounds = array<i64: 1, 32, 32>}, {transform_indices = @transform_4, window_bounds = array<i64: 1, 1, 32>}, {transform_indices = @transform_5, window_bounds = array<i64: 1, 1, 32>}, {transform_indices = @transform_6, window_bounds = array<i64: 1, 1, 32>}, {transform_indices = @transform_7, window_bounds = array<i64: 16, 32>}]} {
    %c0_i32 = arith.constant 0 : i32
    %0 = arith.cmpi eq, %arg1, %c0_i32 : i32
    %1 = arith.extui %0 : i1 to i32
    %c0_i32_0 = arith.constant 0 : i32
    %2 = arith.cmpi ne, %1, %c0_i32_0 : i32
    scf.if %2 {
      %c0_69 = arith.constant 0 : index
      %c0_70 = arith.constant 0 : index
      %225 = vector.load %arg2[%c0_69, %c0_70] : memref<16x32xf32, #tpu.memory_space<vmem>>, vector<16x32xf32>
      %c0_71 = arith.constant 0 : index
      %c0_72 = arith.constant 0 : index
      %226 = vector.load %arg10[%c0_71, %c0_72] : memref<16x32xf32, #tpu.memory_space<vmem>>, vector<16x32xf32>
      tpu.vector_store %arg10[%c0_71, %c0_72], %225 {strides = array<i32>} : memref<16x32xf32, #tpu.memory_space<vmem>>, vector<16x32xf32>,
    } else {
    }
    %c0 = arith.constant 0 : index
    %c0_1 = arith.constant 0 : index
    %3 = vector.load %arg10[%c0, %c0_1] : memref<16x32xf32, #tpu.memory_space<vmem>>, vector<16x32xf32>
    %cst = arith.constant dense<0.000000e+00> : vector<16xf32>
    %4 = vector.multi_reduction <add>, %3, %cst [1] : vector<16x32xf32> to vector<16xf32>
    %5 = vector.shape_cast %4 : vector<16xf32> to vector<16x1xf32>
    %cst_2 = arith.constant 3.200000e+01 : f32
    %6 = vector.broadcast %cst_2 : f32 to vector<16x1xf32>
    %7 = arith.divf %5, %6 : vector<16x1xf32>
    %8 = vector.broadcast %7 : vector<16x1xf32> to vector<16x32xf32>
    %9 = arith.subf %3, %8 : vector<16x32xf32>
    %10 = arith.mulf %9, %9 : vector<16x32xf32>
    %cst_3 = arith.constant dense<0.000000e+00> : vector<16xf32>
    %11 = vector.multi_reduction <add>, %10, %cst_3 [1] : vector<16x32xf32> to vector<16xf32>
    %12 = vector.shape_cast %11 : vector<16xf32> to vector<16x1xf32>
    %cst_4 = arith.constant 3.200000e+01 : f32
    %13 = vector.broadcast %cst_4 : f32 to vector<16x1xf32>
    %14 = arith.divf %12, %13 : vector<16x1xf32>
    %15 = vector.broadcast %7 : vector<16x1xf32> to vector<16x32xf32>
    %16 = arith.subf %3, %15 : vector<16x32xf32>
    %cst_5 = arith.constant 9.99999974E-6 : f32
    %17 = vector.broadcast %cst_5 : f32 to vector<16x1xf32>
    %18 = arith.addf %14, %17 : vector<16x1xf32>
    %19 = math.rsqrt %18 : vector<16x1xf32>
    %20 = vector.broadcast %19 : vector<16x1xf32> to vector<16x32xf32>
    %21 = arith.mulf %16, %20 : vector<16x32xf32>
    %c0_6 = arith.constant 0 : index
    %c0_7 = arith.constant 0 : index
    %c0_8 = arith.constant 0 : index
    %22 = vector.load %arg7[%c0_6, %c0_7, %c0_8] : memref<1x1x32xf32, #tpu.memory_space<vmem>>, vector<1x1x32xf32>
    %23 = vector.shape_cast %22 : vector<1x1x32xf32> to vector<1x32xf32>
    %24 = vector.broadcast %23 : vector<1x32xf32> to vector<16x32xf32>
    %25 = arith.mulf %21, %24 : vector<16x32xf32>
    %c0_9 = arith.constant 0 : index
    %c0_10 = arith.constant 0 : index
    %c0_11 = arith.constant 0 : index
    %26 = vector.load %arg8[%c0_9, %c0_10, %c0_11] : memref<1x1x32xf32, #tpu.memory_space<vmem>>, vector<1x1x32xf32>
    %27 = vector.shape_cast %26 : vector<1x1x32xf32> to vector<1x32xf32>
    %28 = vector.broadcast %27 : vector<1x32xf32> to vector<16x32xf32>
    %29 = arith.addf %25, %28 : vector<16x32xf32>
    %30 = arith.truncf %29 : vector<16x32xf32> to vector<16x32xbf16>
    %c0_12 = arith.constant 0 : index
    %c0_13 = arith.constant 0 : index
    %c0_14 = arith.constant 0 : index
    %31 = vector.load %arg3[%c0_12, %c0_13, %c0_14] : memref<1x32x96xbf16, #tpu.memory_space<vmem>>, vector<1x32x96xbf16>
    %32 = vector.shape_cast %31 : vector<1x32x96xbf16> to vector<32x96xbf16>
    %cst_15 = arith.constant dense<0.000000e+00> : vector<16x96xf32>
    %33 = tpu.matmul %30, %32, %cst_15 {dimension_numbers = #tpu.dot_dimension_numbers<[1], [0], [0], [1], [0, 0, 1, 1], [], []>} : vector<16x32xbf16>, vector<32x96xbf16>, vector<16x96xf32> -> vector<16x96xf32>
    %c0_16 = arith.constant 0 : index
    %c0_17 = arith.constant 0 : index
    %c0_18 = arith.constant 0 : index
    %34 = vector.load %arg4[%c0_16, %c0_17, %c0_18] : memref<1x1x96xf32, #tpu.memory_space<vmem>>, vector<1x1x96xf32>
    %35 = vector.shape_cast %34 : vector<1x1x96xf32> to vector<1x96xf32>
    %36 = vector.broadcast %35 : vector<1x96xf32> to vector<16x96xf32>
    %37 = arith.addf %33, %36 : vector<16x96xf32>
    %38 = vector.extract_strided_slice %37 {offsets = [0, 0], sizes = [16, 32], strides = [1, 1]} : vector<16x96xf32> to vector<16x32xf32>
    %39 = vector.extract_strided_slice %37 {offsets = [0, 32], sizes = [16, 32], strides = [1, 1]} : vector<16x96xf32> to vector<16x32xf32>
    %40 = vector.extract_strided_slice %37 {offsets = [0, 64], sizes = [16, 32], strides = [1, 1]} : vector<16x96xf32> to vector<16x32xf32>
    %41 = vector.extract_strided_slice %38 {offsets = [0, 0], sizes = [8, 8], strides = [1, 1]} : vector<16x32xf32> to vector<8x8xf32>
    %42 = arith.truncf %41 : vector<8x8xf32> to vector<8x8xbf16>
    %43 = vector.extract_strided_slice %39 {offsets = [0, 0], sizes = [8, 8], strides = [1, 1]} : vector<16x32xf32> to vector<8x8xf32>
    %44 = arith.truncf %43 : vector<8x8xf32> to vector<8x8xbf16>
    %45 = vector.extract_strided_slice %40 {offsets = [0, 0], sizes = [8, 8], strides = [1, 1]} : vector<16x32xf32> to vector<8x8xf32>
    %46 = arith.truncf %45 : vector<8x8xf32> to vector<8x8xbf16>
    %cst_19 = arith.constant dense<0.000000e+00> : vector<8x8xf32>
    %47 = tpu.matmul %42, %44, %cst_19 {dimension_numbers = #tpu.dot_dimension_numbers<[1], [1], [0], [0], [0, 0, 1, 0], [], []>} : vector<8x8xbf16>, vector<8x8xbf16>, vector<8x8xf32> -> vector<8x8xf32>
    %cst_20 = arith.constant 0.353553385 : f32
    %48 = vector.broadcast %cst_20 : f32 to vector<8x8xf32>
    %49 = arith.mulf %47, %48 : vector<8x8xf32>
    %cst_21 = arith.constant dense<0xFF800000> : vector<8xf32>
    %50 = vector.multi_reduction <maximumf>, %49, %cst_21 [1] : vector<8x8xf32> to vector<8xf32>
    %51 = vector.shape_cast %50 : vector<8xf32> to vector<8x1xf32>
    %52 = vector.broadcast %51 : vector<8x1xf32> to vector<8x8xf32>
    %53 = arith.subf %49, %52 : vector<8x8xf32>
    %54 = math.exp %53 : vector<8x8xf32>
    %cst_22 = arith.constant dense<0.000000e+00> : vector<8xf32>
    %55 = vector.multi_reduction <add>, %54, %cst_22 [1] : vector<8x8xf32> to vector<8xf32>
    %56 = vector.shape_cast %55 : vector<8xf32> to vector<8x1xf32>
    %57 = tpu.reciprocal %56 {approx = true} : vector<8x1xf32> -> vector<8x1xf32>
    %58 = vector.broadcast %57 : vector<8x1xf32> to vector<8x8xf32>
    %59 = arith.mulf %54, %58 : vector<8x8xf32>
    %60 = arith.truncf %59 : vector<8x8xf32> to vector<8x8xbf16>
    %cst_23 = arith.constant dense<0.000000e+00> : vector<8x8xf32>
    %61 = tpu.matmul %60, %46, %cst_23 {dimension_numbers = #tpu.dot_dimension_numbers<[1], [0], [0], [1], [0, 0, 1, 1], [], []>} : vector<8x8xbf16>, vector<8x8xbf16>, vector<8x8xf32> -> vector<8x8xf32>
    %62 = vector.extract_strided_slice %38 {offsets = [0, 8], sizes = [8, 8], strides = [1, 1]} : vector<16x32xf32> to vector<8x8xf32>
    %63 = arith.truncf %62 : vector<8x8xf32> to vector<8x8xbf16>
    %64 = vector.extract_strided_slice %39 {offsets = [0, 8], sizes = [8, 8], strides = [1, 1]} : vector<16x32xf32> to vector<8x8xf32>
    %65 = arith.truncf %64 : vector<8x8xf32> to vector<8x8xbf16>
    %66 = vector.extract_strided_slice %40 {offsets = [0, 8], sizes = [8, 8], strides = [1, 1]} : vector<16x32xf32> to vector<8x8xf32>
    %67 = arith.truncf %66 : vector<8x8xf32> to vector<8x8xbf16>
    %cst_24 = arith.constant dense<0.000000e+00> : vector<8x8xf32>
    %68 = tpu.matmul %63, %65, %cst_24 {dimension_numbers = #tpu.dot_dimension_numbers<[1], [1], [0], [0], [0, 0, 1, 0], [], []>} : vector<8x8xbf16>, vector<8x8xbf16>, vector<8x8xf32> -> vector<8x8xf32>
    %cst_25 = arith.constant 0.353553385 : f32
    %69 = vector.broadcast %cst_25 : f32 to vector<8x8xf32>
    %70 = arith.mulf %68, %69 : vector<8x8xf32>
    %cst_26 = arith.constant dense<0xFF800000> : vector<8xf32>
    %71 = vector.multi_reduction <maximumf>, %70, %cst_26 [1] : vector<8x8xf32> to vector<8xf32>
    %72 = vector.shape_cast %71 : vector<8xf32> to vector<8x1xf32>
    %73 = vector.broadcast %72 : vector<8x1xf32> to vector<8x8xf32>
    %74 = arith.subf %70, %73 : vector<8x8xf32>
    %75 = math.exp %74 : vector<8x8xf32>
    %cst_27 = arith.constant dense<0.000000e+00> : vector<8xf32>
    %76 = vector.multi_reduction <add>, %75, %cst_27 [1] : vector<8x8xf32> to vector<8xf32>
    %77 = vector.shape_cast %76 : vector<8xf32> to vector<8x1xf32>
    %78 = tpu.reciprocal %77 {approx = true} : vector<8x1xf32> -> vector<8x1xf32>
    %79 = vector.broadcast %78 : vector<8x1xf32> to vector<8x8xf32>
    %80 = arith.mulf %75, %79 : vector<8x8xf32>
    %81 = arith.truncf %80 : vector<8x8xf32> to vector<8x8xbf16>
    %cst_28 = arith.constant dense<0.000000e+00> : vector<8x8xf32>
    %82 = tpu.matmul %81, %67, %cst_28 {dimension_numbers = #tpu.dot_dimension_numbers<[1], [0], [0], [1], [0, 0, 1, 1], [], []>} : vector<8x8xbf16>, vector<8x8xbf16>, vector<8x8xf32> -> vector<8x8xf32>
    %83 = vector.extract_strided_slice %38 {offsets = [0, 16], sizes = [8, 8], strides = [1, 1]} : vector<16x32xf32> to vector<8x8xf32>
    %84 = arith.truncf %83 : vector<8x8xf32> to vector<8x8xbf16>
    %85 = vector.extract_strided_slice %39 {offsets = [0, 16], sizes = [8, 8], strides = [1, 1]} : vector<16x32xf32> to vector<8x8xf32>
    %86 = arith.truncf %85 : vector<8x8xf32> to vector<8x8xbf16>
    %87 = vector.extract_strided_slice %40 {offsets = [0, 16], sizes = [8, 8], strides = [1, 1]} : vector<16x32xf32> to vector<8x8xf32>
    %88 = arith.truncf %87 : vector<8x8xf32> to vector<8x8xbf16>
    %cst_29 = arith.constant dense<0.000000e+00> : vector<8x8xf32>
    %89 = tpu.matmul %84, %86, %cst_29 {dimension_numbers = #tpu.dot_dimension_numbers<[1], [1], [0], [0], [0, 0, 1, 0], [], []>} : vector<8x8xbf16>, vector<8x8xbf16>, vector<8x8xf32> -> vector<8x8xf32>
    %cst_30 = arith.constant 0.353553385 : f32
    %90 = vector.broadcast %cst_30 : f32 to vector<8x8xf32>
    %91 = arith.mulf %89, %90 : vector<8x8xf32>
    %cst_31 = arith.constant dense<0xFF800000> : vector<8xf32>
    %92 = vector.multi_reduction <maximumf>, %91, %cst_31 [1] : vector<8x8xf32> to vector<8xf32>
    %93 = vector.shape_cast %92 : vector<8xf32> to vector<8x1xf32>
    %94 = vector.broadcast %93 : vector<8x1xf32> to vector<8x8xf32>
    %95 = arith.subf %91, %94 : vector<8x8xf32>
    %96 = math.exp %95 : vector<8x8xf32>
    %cst_32 = arith.constant dense<0.000000e+00> : vector<8xf32>
    %97 = vector.multi_reduction <add>, %96, %cst_32 [1] : vector<8x8xf32> to vector<8xf32>
    %98 = vector.shape_cast %97 : vector<8xf32> to vector<8x1xf32>
    %99 = tpu.reciprocal %98 {approx = true} : vector<8x1xf32> -> vector<8x1xf32>
    %100 = vector.broadcast %99 : vector<8x1xf32> to vector<8x8xf32>
    %101 = arith.mulf %96, %100 : vector<8x8xf32>
    %102 = arith.truncf %101 : vector<8x8xf32> to vector<8x8xbf16>
    %cst_33 = arith.constant dense<0.000000e+00> : vector<8x8xf32>
    %103 = tpu.matmul %102, %88, %cst_33 {dimension_numbers = #tpu.dot_dimension_numbers<[1], [0], [0], [1], [0, 0, 1, 1], [], []>} : vector<8x8xbf16>, vector<8x8xbf16>, vector<8x8xf32> -> vector<8x8xf32>
    %104 = vector.extract_strided_slice %38 {offsets = [0, 24], sizes = [8, 8], strides = [1, 1]} : vector<16x32xf32> to vector<8x8xf32>
    %105 = arith.truncf %104 : vector<8x8xf32> to vector<8x8xbf16>
    %106 = vector.extract_strided_slice %39 {offsets = [0, 24], sizes = [8, 8], strides = [1, 1]} : vector<16x32xf32> to vector<8x8xf32>
    %107 = arith.truncf %106 : vector<8x8xf32> to vector<8x8xbf16>
    %108 = vector.extract_strided_slice %40 {offsets = [0, 24], sizes = [8, 8], strides = [1, 1]} : vector<16x32xf32> to vector<8x8xf32>
    %109 = arith.truncf %108 : vector<8x8xf32> to vector<8x8xbf16>
    %cst_34 = arith.constant dense<0.000000e+00> : vector<8x8xf32>
    %110 = tpu.matmul %105, %107, %cst_34 {dimension_numbers = #tpu.dot_dimension_numbers<[1], [1], [0], [0], [0, 0, 1, 0], [], []>} : vector<8x8xbf16>, vector<8x8xbf16>, vector<8x8xf32> -> vector<8x8xf32>
    %cst_35 = arith.constant 0.353553385 : f32
    %111 = vector.broadcast %cst_35 : f32 to vector<8x8xf32>
    %112 = arith.mulf %110, %111 : vector<8x8xf32>
    %cst_36 = arith.constant dense<0xFF800000> : vector<8xf32>
    %113 = vector.multi_reduction <maximumf>, %112, %cst_36 [1] : vector<8x8xf32> to vector<8xf32>
    %114 = vector.shape_cast %113 : vector<8xf32> to vector<8x1xf32>
    %115 = vector.broadcast %114 : vector<8x1xf32> to vector<8x8xf32>
    %116 = arith.subf %112, %115 : vector<8x8xf32>
    %117 = math.exp %116 : vector<8x8xf32>
    %cst_37 = arith.constant dense<0.000000e+00> : vector<8xf32>
    %118 = vector.multi_reduction <add>, %117, %cst_37 [1] : vector<8x8xf32> to vector<8xf32>
    %119 = vector.shape_cast %118 : vector<8xf32> to vector<8x1xf32>
    %120 = tpu.reciprocal %119 {approx = true} : vector<8x1xf32> -> vector<8x1xf32>
    %121 = vector.broadcast %120 : vector<8x1xf32> to vector<8x8xf32>
    %122 = arith.mulf %117, %121 : vector<8x8xf32>
    %123 = arith.truncf %122 : vector<8x8xf32> to vector<8x8xbf16>
    %cst_38 = arith.constant dense<0.000000e+00> : vector<8x8xf32>
    %124 = tpu.matmul %123, %109, %cst_38 {dimension_numbers = #tpu.dot_dimension_numbers<[1], [0], [0], [1], [0, 0, 1, 1], [], []>} : vector<8x8xbf16>, vector<8x8xbf16>, vector<8x8xf32> -> vector<8x8xf32>
    %125 = tpu.concatenate %61, %82, %103, %124 in 1 : vector<8x8xf32>, vector<8x8xf32>, vector<8x8xf32>, vector<8x8xf32> -> vector<8x32xf32>
    %126 = vector.extract_strided_slice %38 {offsets = [8, 0], sizes = [8, 8], strides = [1, 1]} : vector<16x32xf32> to vector<8x8xf32>
    %127 = arith.truncf %126 : vector<8x8xf32> to vector<8x8xbf16>
    %128 = vector.extract_strided_slice %39 {offsets = [8, 0], sizes = [8, 8], strides = [1, 1]} : vector<16x32xf32> to vector<8x8xf32>
    %129 = arith.truncf %128 : vector<8x8xf32> to vector<8x8xbf16>
    %130 = vector.extract_strided_slice %40 {offsets = [8, 0], sizes = [8, 8], strides = [1, 1]} : vector<16x32xf32> to vector<8x8xf32>
    %131 = arith.truncf %130 : vector<8x8xf32> to vector<8x8xbf16>
    %cst_39 = arith.constant dense<0.000000e+00> : vector<8x8xf32>
    %132 = tpu.matmul %127, %129, %cst_39 {dimension_numbers = #tpu.dot_dimension_numbers<[1], [1], [0], [0], [0, 0, 1, 0], [], []>} : vector<8x8xbf16>, vector<8x8xbf16>, vector<8x8xf32> -> vector<8x8xf32>
    %cst_40 = arith.constant 0.353553385 : f32
    %133 = vector.broadcast %cst_40 : f32 to vector<8x8xf32>
    %134 = arith.mulf %132, %133 : vector<8x8xf32>
    %cst_41 = arith.constant dense<0xFF800000> : vector<8xf32>
    %135 = vector.multi_reduction <maximumf>, %134, %cst_41 [1] : vector<8x8xf32> to vector<8xf32>
    %136 = vector.shape_cast %135 : vector<8xf32> to vector<8x1xf32>
    %137 = vector.broadcast %136 : vector<8x1xf32> to vector<8x8xf32>
    %138 = arith.subf %134, %137 : vector<8x8xf32>
    %139 = math.exp %138 : vector<8x8xf32>
    %cst_42 = arith.constant dense<0.000000e+00> : vector<8xf32>
    %140 = vector.multi_reduction <add>, %139, %cst_42 [1] : vector<8x8xf32> to vector<8xf32>
    %141 = vector.shape_cast %140 : vector<8xf32> to vector<8x1xf32>
    %142 = tpu.reciprocal %141 {approx = true} : vector<8x1xf32> -> vector<8x1xf32>
    %143 = vector.broadcast %142 : vector<8x1xf32> to vector<8x8xf32>
    %144 = arith.mulf %139, %143 : vector<8x8xf32>
    %145 = arith.truncf %144 : vector<8x8xf32> to vector<8x8xbf16>
    %cst_43 = arith.constant dense<0.000000e+00> : vector<8x8xf32>
    %146 = tpu.matmul %145, %131, %cst_43 {dimension_numbers = #tpu.dot_dimension_numbers<[1], [0], [0], [1], [0, 0, 1, 1], [], []>} : vector<8x8xbf16>, vector<8x8xbf16>, vector<8x8xf32> -> vector<8x8xf32>
    %147 = vector.extract_strided_slice %38 {offsets = [8, 8], sizes = [8, 8], strides = [1, 1]} : vector<16x32xf32> to vector<8x8xf32>
    %148 = arith.truncf %147 : vector<8x8xf32> to vector<8x8xbf16>
    %149 = vector.extract_strided_slice %39 {offsets = [8, 8], sizes = [8, 8], strides = [1, 1]} : vector<16x32xf32> to vector<8x8xf32>
    %150 = arith.truncf %149 : vector<8x8xf32> to vector<8x8xbf16>
    %151 = vector.extract_strided_slice %40 {offsets = [8, 8], sizes = [8, 8], strides = [1, 1]} : vector<16x32xf32> to vector<8x8xf32>
    %152 = arith.truncf %151 : vector<8x8xf32> to vector<8x8xbf16>
    %cst_44 = arith.constant dense<0.000000e+00> : vector<8x8xf32>
    %153 = tpu.matmul %148, %150, %cst_44 {dimension_numbers = #tpu.dot_dimension_numbers<[1], [1], [0], [0], [0, 0, 1, 0], [], []>} : vector<8x8xbf16>, vector<8x8xbf16>, vector<8x8xf32> -> vector<8x8xf32>
    %cst_45 = arith.constant 0.353553385 : f32
    %154 = vector.broadcast %cst_45 : f32 to vector<8x8xf32>
    %155 = arith.mulf %153, %154 : vector<8x8xf32>
    %cst_46 = arith.constant dense<0xFF800000> : vector<8xf32>
    %156 = vector.multi_reduction <maximumf>, %155, %cst_46 [1] : vector<8x8xf32> to vector<8xf32>
    %157 = vector.shape_cast %156 : vector<8xf32> to vector<8x1xf32>
    %158 = vector.broadcast %157 : vector<8x1xf32> to vector<8x8xf32>
    %159 = arith.subf %155, %158 : vector<8x8xf32>
    %160 = math.exp %159 : vector<8x8xf32>
    %cst_47 = arith.constant dense<0.000000e+00> : vector<8xf32>
    %161 = vector.multi_reduction <add>, %160, %cst_47 [1] : vector<8x8xf32> to vector<8xf32>
    %162 = vector.shape_cast %161 : vector<8xf32> to vector<8x1xf32>
    %163 = tpu.reciprocal %162 {approx = true} : vector<8x1xf32> -> vector<8x1xf32>
    %164 = vector.broadcast %163 : vector<8x1xf32> to vector<8x8xf32>
    %165 = arith.mulf %160, %164 : vector<8x8xf32>
    %166 = arith.truncf %165 : vector<8x8xf32> to vector<8x8xbf16>
    %cst_48 = arith.constant dense<0.000000e+00> : vector<8x8xf32>
    %167 = tpu.matmul %166, %152, %cst_48 {dimension_numbers = #tpu.dot_dimension_numbers<[1], [0], [0], [1], [0, 0, 1, 1], [], []>} : vector<8x8xbf16>, vector<8x8xbf16>, vector<8x8xf32> -> vector<8x8xf32>
    %168 = vector.extract_strided_slice %38 {offsets = [8, 16], sizes = [8, 8], strides = [1, 1]} : vector<16x32xf32> to vector<8x8xf32>
    %169 = arith.truncf %168 : vector<8x8xf32> to vector<8x8xbf16>
    %170 = vector.extract_strided_slice %39 {offsets = [8, 16], sizes = [8, 8], strides = [1, 1]} : vector<16x32xf32> to vector<8x8xf32>
    %171 = arith.truncf %170 : vector<8x8xf32> to vector<8x8xbf16>
    %172 = vector.extract_strided_slice %40 {offsets = [8, 16], sizes = [8, 8], strides = [1, 1]} : vector<16x32xf32> to vector<8x8xf32>
    %173 = arith.truncf %172 : vector<8x8xf32> to vector<8x8xbf16>
    %cst_49 = arith.constant dense<0.000000e+00> : vector<8x8xf32>
    %174 = tpu.matmul %169, %171, %cst_49 {dimension_numbers = #tpu.dot_dimension_numbers<[1], [1], [0], [0], [0, 0, 1, 0], [], []>} : vector<8x8xbf16>, vector<8x8xbf16>, vector<8x8xf32> -> vector<8x8xf32>
    %cst_50 = arith.constant 0.353553385 : f32
    %175 = vector.broadcast %cst_50 : f32 to vector<8x8xf32>
    %176 = arith.mulf %174, %175 : vector<8x8xf32>
    %cst_51 = arith.constant dense<0xFF800000> : vector<8xf32>
    %177 = vector.multi_reduction <maximumf>, %176, %cst_51 [1] : vector<8x8xf32> to vector<8xf32>
    %178 = vector.shape_cast %177 : vector<8xf32> to vector<8x1xf32>
    %179 = vector.broadcast %178 : vector<8x1xf32> to vector<8x8xf32>
    %180 = arith.subf %176, %179 : vector<8x8xf32>
    %181 = math.exp %180 : vector<8x8xf32>
    %cst_52 = arith.constant dense<0.000000e+00> : vector<8xf32>
    %182 = vector.multi_reduction <add>, %181, %cst_52 [1] : vector<8x8xf32> to vector<8xf32>
    %183 = vector.shape_cast %182 : vector<8xf32> to vector<8x1xf32>
    %184 = tpu.reciprocal %183 {approx = true} : vector<8x1xf32> -> vector<8x1xf32>
    %185 = vector.broadcast %184 : vector<8x1xf32> to vector<8x8xf32>
    %186 = arith.mulf %181, %185 : vector<8x8xf32>
    %187 = arith.truncf %186 : vector<8x8xf32> to vector<8x8xbf16>
    %cst_53 = arith.constant dense<0.000000e+00> : vector<8x8xf32>
    %188 = tpu.matmul %187, %173, %cst_53 {dimension_numbers = #tpu.dot_dimension_numbers<[1], [0], [0], [1], [0, 0, 1, 1], [], []>} : vector<8x8xbf16>, vector<8x8xbf16>, vector<8x8xf32> -> vector<8x8xf32>
    %189 = vector.extract_strided_slice %38 {offsets = [8, 24], sizes = [8, 8], strides = [1, 1]} : vector<16x32xf32> to vector<8x8xf32>
    %190 = arith.truncf %189 : vector<8x8xf32> to vector<8x8xbf16>
    %191 = vector.extract_strided_slice %39 {offsets = [8, 24], sizes = [8, 8], strides = [1, 1]} : vector<16x32xf32> to vector<8x8xf32>
    %192 = arith.truncf %191 : vector<8x8xf32> to vector<8x8xbf16>
    %193 = vector.extract_strided_slice %40 {offsets = [8, 24], sizes = [8, 8], strides = [1, 1]} : vector<16x32xf32> to vector<8x8xf32>
    %194 = arith.truncf %193 : vector<8x8xf32> to vector<8x8xbf16>
    %cst_54 = arith.constant dense<0.000000e+00> : vector<8x8xf32>
    %195 = tpu.matmul %190, %192, %cst_54 {dimension_numbers = #tpu.dot_dimension_numbers<[1], [1], [0], [0], [0, 0, 1, 0], [], []>} : vector<8x8xbf16>, vector<8x8xbf16>, vector<8x8xf32> -> vector<8x8xf32>
    %cst_55 = arith.constant 0.353553385 : f32
    %196 = vector.broadcast %cst_55 : f32 to vector<8x8xf32>
    %197 = arith.mulf %195, %196 : vector<8x8xf32>
    %cst_56 = arith.constant dense<0xFF800000> : vector<8xf32>
    %198 = vector.multi_reduction <maximumf>, %197, %cst_56 [1] : vector<8x8xf32> to vector<8xf32>
    %199 = vector.shape_cast %198 : vector<8xf32> to vector<8x1xf32>
    %200 = vector.broadcast %199 : vector<8x1xf32> to vector<8x8xf32>
    %201 = arith.subf %197, %200 : vector<8x8xf32>
    %202 = math.exp %201 : vector<8x8xf32>
    %cst_57 = arith.constant dense<0.000000e+00> : vector<8xf32>
    %203 = vector.multi_reduction <add>, %202, %cst_57 [1] : vector<8x8xf32> to vector<8xf32>
    %204 = vector.shape_cast %203 : vector<8xf32> to vector<8x1xf32>
    %205 = tpu.reciprocal %204 {approx = true} : vector<8x1xf32> -> vector<8x1xf32>
    %206 = vector.broadcast %205 : vector<8x1xf32> to vector<8x8xf32>
    %207 = arith.mulf %202, %206 : vector<8x8xf32>
    %208 = arith.truncf %207 : vector<8x8xf32> to vector<8x8xbf16>
    %cst_58 = arith.constant dense<0.000000e+00> : vector<8x8xf32>
    %209 = tpu.matmul %208, %194, %cst_58 {dimension_numbers = #tpu.dot_dimension_numbers<[1], [0], [0], [1], [0, 0, 1, 1], [], []>} : vector<8x8xbf16>, vector<8x8xbf16>, vector<8x8xf32> -> vector<8x8xf32>
    %210 = tpu.concatenate %146, %167, %188, %209 in 1 : vector<8x8xf32>, vector<8x8xf32>, vector<8x8xf32>, vector<8x8xf32> -> vector<8x32xf32>
    %211 = tpu.concatenate %125, %210 in 0 : vector<8x32xf32>, vector<8x32xf32> -> vector<16x32xf32>
    %212 = arith.truncf %211 : vector<16x32xf32> to vector<16x32xbf16>
    %c0_59 = arith.constant 0 : index
    %c0_60 = arith.constant 0 : index
    %c0_61 = arith.constant 0 : index
    %213 = vector.load %arg5[%c0_59, %c0_60, %c0_61] : memref<1x32x32xbf16, #tpu.memory_space<vmem>>, vector<1x32x32xbf16>
    %214 = vector.shape_cast %213 : vector<1x32x32xbf16> to vector<32x32xbf16>
    %cst_62 = arith.constant dense<0.000000e+00> : vector<16x32xf32>
    %215 = tpu.matmul %212, %214, %cst_62 {dimension_numbers = #tpu.dot_dimension_numbers<[1], [0], [0], [1], [0, 0, 1, 1], [], []>} : vector<16x32xbf16>, vector<32x32xbf16>, vector<16x32xf32> -> vector<16x32xf32>
    %c0_63 = arith.constant 0 : index
    %c0_64 = arith.constant 0 : index
    %c0_65 = arith.constant 0 : index
    %216 = vector.load %arg6[%c0_63, %c0_64, %c0_65] : memref<1x1x32xf32, #tpu.memory_space<vmem>>, vector<1x1x32xf32>
    %217 = vector.shape_cast %216 : vector<1x1x32xf32> to vector<1x32xf32>
    %218 = vector.broadcast %217 : vector<1x32xf32> to vector<16x32xf32>
    %219 = arith.addf %215, %218 : vector<16x32xf32>
    %220 = arith.addf %3, %219 : vector<16x32xf32>
    %c0_66 = arith.constant 0 : index
    %c0_67 = arith.constant 0 : index
    %221 = vector.load %arg10[%c0_66, %c0_67] : memref<16x32xf32, #tpu.memory_space<vmem>>, vector<16x32xf32>
    tpu.vector_store %arg10[%c0_66, %c0_67], %220 {strides = array<i32>} : memref<16x32xf32, #tpu.memory_space<vmem>>, vector<16x32xf32>,
    %c1_i32 = arith.constant 1 : i32
    %222 = arith.cmpi eq, %arg1, %c1_i32 : i32
    %223 = arith.extui %222 : i1 to i32
    %c0_i32_68 = arith.constant 0 : i32
    %224 = arith.cmpi ne, %223, %c0_i32_68 : i32
    scf.if %224 {
      %c0_69 = arith.constant 0 : index
      %c0_70 = arith.constant 0 : index
      %225 = vector.load %arg9[%c0_69, %c0_70] : memref<16x32xf32, #tpu.memory_space<vmem>>, vector<16x32xf32>
      tpu.vector_store %arg9[%c0_69, %c0_70], %220 {strides = array<i32>} : memref<16x32xf32, #tpu.memory_space<vmem>>, vector<16x32xf32>,
    } else {
    }
    return
  }
  func.func @transform_0(%arg0: i32, %arg1: i32) -> (i32, i32) {
    %c0_i32 = arith.constant 0 : i32
    %c0_i32_0 = arith.constant 0 : i32
    return %arg0, %c0_i32 : i32, i32
  }
  func.func @transform_1(%arg0: i32, %arg1: i32) -> (i32, i32, i32) {
    %c0_i32 = arith.constant 0 : i32
    %c0_i32_0 = arith.constant 0 : i32
    %c0_i32_1 = arith.constant 0 : i32
    return %arg1, %c0_i32, %c0_i32_0 : i32, i32, i32
  }
  func.func @transform_2(%arg0: i32, %arg1: i32) -> (i32, i32, i32) {
    %c0_i32 = arith.constant 0 : i32
    %c0_i32_0 = arith.constant 0 : i32
    %c0_i32_1 = arith.constant 0 : i32
    return %arg1, %c0_i32, %c0_i32_0 : i32, i32, i32
  }
  func.func @transform_3(%arg0: i32, %arg1: i32) -> (i32, i32, i32) {
    %c0_i32 = arith.constant 0 : i32
    %c0_i32_0 = arith.constant 0 : i32
    %c0_i32_1 = arith.constant 0 : i32
    return %arg1, %c0_i32, %c0_i32_0 : i32, i32, i32
  }
  func.func @transform_4(%arg0: i32, %arg1: i32) -> (i32, i32, i32) {
    %c0_i32 = arith.constant 0 : i32
    %c0_i32_0 = arith.constant 0 : i32
    %c0_i32_1 = arith.constant 0 : i32
    return %arg1, %c0_i32, %c0_i32_0 : i32, i32, i32
  }
  func.func @transform_5(%arg0: i32, %arg1: i32) -> (i32, i32, i32) {
    %c0_i32 = arith.constant 0 : i32
    %c0_i32_0 = arith.constant 0 : i32
    %c0_i32_1 = arith.constant 0 : i32
    return %arg1, %c0_i32, %c0_i32_0 : i32, i32, i32
  }
  func.func @transform_6(%arg0: i32, %arg1: i32) -> (i32, i32, i32) {
    %c0_i32 = arith.constant 0 : i32
    %c0_i32_0 = arith.constant 0 : i32
    %c0_i32_1 = arith.constant 0 : i32
    return %arg1, %c0_i32, %c0_i32_0 : i32, i32, i32
  }
  func.func @transform_7(%arg0: i32, %arg1: i32) -> (i32, i32) {
    %c0_i32 = arith.constant 0 : i32
    %c0_i32_0 = arith.constant 0 : i32
    return %arg0, %c0_i32 : i32, i32
  }
}

</mosaic_0001>

<bundles_post_ra>
// kernel: tpu_custom_call.1
= control target key start
LH: loop header
LB: loop body
LE: loop exit
PB: predicated region body
PF: predicated region fallthrough
CT: control target
= control target key end

     0   :  { %s2145_s0 = inlined_call_operand.hbm [shape: f32[16,32], index: 0, kind: input, shape index: {}]   ;;  %s2146_s1 = inlined_call_operand.hbm [shape: bf16[2,32,96], index: 1, kind: input, shape index: {}]   ;;  %s2147_s2 = inlined_call_operand.hbm [shape: f32[2,1,96], index: 2, kind: input, shape index: {}]   ;;  %s2148_s3 = inlined_call_operand.hbm [shape: bf16[2,32,32], index: 3, kind: input, shape index: {}]   ;;  %s2149_s4 = inlined_call_operand.vmem [shape: f32[2,1,32], index: 4, kind: input, shape index: {}]   ;;  %s2150_s5 = inlined_call_operand.vmem [shape: f32[2,1,32], index: 5, kind: input, shape index: {}]   ;;  %s2151_s6 = inlined_call_operand.hbm [shape: f32[2,1,32], index: 6, kind: input, shape index: {}]   ;;  %s2152_s7 = inlined_call_operand.hbm [shape: f32[16,32], index: 7, kind: output, shape index: {}]  }
   0x1   :  { %2155 = sst [smem:[#allocation20_spill]] %s2145_s0 }
   0x2   :  { %2156 = sst [smem:[#allocation21_spill]] %s2146_s1 }
   0x3   :  { %2157 = sst [smem:[#allocation22_spill]] %s2148_s3 }
   0x4   :  { %12 = vsyncpa [#allocation4], 0 }
   0x5   :  { %13 = vsyncpa [#allocation7], 0 }
   0x6   :  { %15 = vsyncpa [#allocation7 + $0x1], 0 }
   0x7   :  { %16 = vsyncpa [#allocation10], 0 }
   0x8   :  { %18 = vsyncpa [#allocation10 + $0x1], 0 }
   0x9   :  { %19 = vsyncpa [#allocation5], 0  ;;  %s1808_s24 = smov 0   ;;  %s1810_s25 = smov 0  }
   0xa   :  { %s1812_s26 = smov 0   ;;  %s1814_s27 = smov 0  }
   0xb   :  { %s1816_s28 = smov 0   ;;  %s1818_s29 = smov 0  }
   0xc LB: > { %2158 = sst [smem:[#allocation17_spill]] %s1732_s26  ;;  %s34_s30 = sadd.s32 1, %s1740_s28  ;;  %s1744_s29 = sphi %s1818_s29, %s25_s29   ;;  %s1740_s28 = sphi %s1816_s28, %s2174_s28   ;;  %s1736_s27 = sphi %s1814_s27, %s2173_s27   ;;  %s1732_s26 = sphi %s1812_s26, %s2169_s26   ;;  %s1728_s25 = sphi %s1810_s25, %s2172_s25   ;;  %s1724_s24 = sphi %s1808_s24, %s2171_s24  }
   0xd   : > { %s70_s8 = sadd.s32 1, %s1732_s26  ;;  %p35_p0 = scmp.ge.s32.totalorder %s34_s30, 2 }
   0xe   : > { %p77_p1 = scmp.ne.s32.totalorder %s1732_s26, %s1728_s25  ;;  %p78_p2 = scmp.eq.s32.totalorder %s1744_s29, 0 }
   0xf   : > { %s2176_s30 = smov (%p35_p0, %s34_s30), 0  ;;  %p1373_p4 = scmp.lt.s32.totalorder %s1744_s29, 2 }
  0x10   : > { %2159 = sst [smem:[#allocation18_spill]] %s2176_s30  ;;  %p1845_p3 = por %p78_p2, %p77_p1 }
  0x11   : > { %s67_s10 = ssub.s32 %s1740_s28, %s2176_s30  ;;  %s280_s11 = sand.u32 1, %s1744_s29  }
  0x12   : > { %p68_p5 = scmp.eq.s32.totalorder %s67_s10, 0  ;;  %s1854_s12 = sand.u32 1, %s1732_s26  }
  0x13   : > { %s1333_s13 = sshll.u32 %s1740_s28, 4  ;;  %s1283_s15 = sshll.u32 %s1854_s12, 4 }
  0x14   : > { %s1858_s14 = scalar_select %p68_p5, %s1732_s26, %s70_s8  }
  0x15   : > { %s2162_s1 = sld [smem:[#allocation21_spill]]  ;;  %s284_s20 = scalar_lea.vmem [#allocation6], %s1283_s15 }
  0x16   : > { %2161 = sst [smem:[#allocation19_spill]] %s1858_s14  ;;  %s292_s21 = sshll.u32 %s284_s20, 4  ;;  %s293_s21 = int_to_ptr.vmem [resolvable:$true] %s292_s21 }
  0x17   : > { %p1868_p6 = pnand %p1373_p4, %p1845_p3  ;;  %s1872_s23 = scalar_lea.sflag [#allocation7], %s280_s11 }
  0x18   : > { %s1746_s8 = smov 64   ;;  %s1747_s10 = smov 4  }
  0x19   : > { %s2164_s3 = sld [smem:[#allocation22_spill]]  ;;  %s323_s20 = scalar_lea.vmem [#allocation9], %s1283_s15 }
  0x1a   : > { %s1880_s30 = scalar_lea.sflag [#allocation10], %s280_s11  ;;  %s1886_s14 = sadd.s32 4294967295, %s1744_s29  }
  0x1b   : > { %s289_s18 = scalar_lea.hbm %s2162_s1, %s1333_s13  ;;  %s331_s1 = sshll.u32 %s323_s20, 4  ;;  %s332_s1 = int_to_ptr.vmem [resolvable:$true] %s331_s1 }
  0x1c   : > { %s290_s19 = sshll.u32 %s289_s18, 4  ;;  %p83_p7 = scmp.ne.s32.totalorder %s1728_s25, %s1724_s24  ;;  %s291_s19 = int_to_ptr.hbm [resolvable:$true] %s290_s19 }
  0x1d   : > { %1362 = dma.hbm_to_vmem [thread:$0]  (!%p1868_p6), %s291_s19, 256, %s293_s21, %s1872_s23, %s1746_s8, %s1746_s8, %s1747_s10  }
  0x1e   : > { %p84_p8 = scmp.eq.s32.totalorder %s1886_s14, 0  ;;  %p1280_p9 = scmp.ge.s32.totalorder %s1744_s29, 1 }
  0x1f   : > { %s328_s9 = scalar_lea.hbm %s2164_s3, %s1333_s13  ;;  %p250_p10 = scmp.lt.s32.totalorder %s1744_s29, 3 }
  0x20   : > { %s329_s18 = sshll.u32 %s328_s9, 4  ;;  %p1895_p11 = por %p84_p8, %p83_p7  ;;  %s330_s18 = int_to_ptr.hbm [resolvable:$true] %s329_s18 }
  0x21   : > { %1368 = dma.hbm_to_vmem [thread:$0]  (!%p1868_p6), %s330_s18, 256, %s332_s1, %s1880_s30, %s1746_s8, %s1746_s8, %s1747_s10  }
  0x22   : > { %s2166_s0 = sld [smem:[#allocation20_spill]]  ;;  %p1902_p12 = pnand %p1280_p9, %p250_p10 }
  0x23   : > { %s1748_s24 = smov [#allocation3]   ;;  %s308_s16 = scalar_lea.hbm %s2147_s2, %s1740_s28 }
  0x24   : > { %p1355_p13 = pneg %p1902_p12  ;;  %s266_s21 = sshll.u32 %s1748_s24, 4  ;;  %s267_s21 = int_to_ptr.vmem [resolvable:$true] %s266_s21 }
  0x25   : > { %s305_s17 = scalar_lea.vmem [#allocation8], %s1854_s12  ;;  %s310_s18 = sshll.u32 %s308_s16, 4  ;;  %s311_s18 = int_to_ptr.hbm [resolvable:$true] %s310_s18 }
  0x26   : > { %p1356_p0 = pnand %p1355_p13, %p84_p8  ;;  %s312_s9 = sshll.u32 %s305_s17, 4  ;;  %s313_s9 = int_to_ptr.vmem [resolvable:$true] %s312_s9 }
  0x27   : > { %s1749_s20 = smov 128   ;;  %s1750_s11 = smov 8  }
  0x28   : > { %s264_s19 = sshll.u32 %s2166_s0, 4  ;;  %s359_s0 = scalar_lea.hbm %s2151_s6, %s1740_s28  ;;  %s265_s19 = int_to_ptr.hbm [resolvable:$true] %s264_s19 }
  0x29   : > { %1358 = dma.hbm_to_vmem [thread:$0]  (!%p1356_p0), %s265_s19, 256, %s267_s21, [#allocation4], %s1749_s20, %s1749_s20, %s1750_s11  }
  0x2a   : > { %1365 = dma.hbm_to_vmem [thread:$0]  (!%p1868_p6), %s311_s18, 16, %s313_s9, %s1872_s23  }
  0x2b   : > { %s361_s3 = sshll.u32 %s359_s0, 4  ;;  %s356_s26 = scalar_lea.vmem [#allocation11], %s1854_s12  ;;  %s362_s3 = int_to_ptr.hbm [resolvable:$true] %s361_s3 }
  0x2c   : > { %s363_s8 = sshll.u32 %s356_s26, 4  ;;  %372 = sbr.rel (%p1902_p12) target bundleno = 1496 (0x5d8), region = 48  ;;  %s364_s8 = int_to_ptr.vmem [resolvable:$true] %s363_s8 }
  0x2d   : > { %1371 = dma.hbm_to_vmem [thread:$0]  (!%p1868_p6), %s362_s3, 16, %s364_s8, %s1880_s30  }
  0x31   : > { %1707 = dma.done.wait (%p84_p8), [#allocation4], 256  }
  0x32   : > { %1709 = vsyncadd (%p84_p8), [#allocation4], 4294967040  ;;  %s379_s23 = sand.u32 1, %s1886_s14   ;;  %s1934_s0 = sand.u32 1, %s1728_s25  }
  0x33   : > { %s1291_s26 = sshll.u32 %s1934_s0, 4  ;;  %s380_s12 = scalar_lea.sflag [#allocation7], %s379_s23 }
  0x34   : > { %s1937_s22 = scalar_lea.vmem [#allocation6], %s1291_s26 }
  0x35   : > { %1711 = dma.done.wait (%p1895_p11), %s380_s12, 272  }
  0x36   : > { %1713 = vsyncadd (%p1895_p11), %s380_s12, 4294967024  ;;  %s392_s3 = scalar_lea.vmem [#allocation8], %s1934_s0  ;;  %s399_s30 = scalar_lea.sflag [#allocation10], %s379_s23 }
  0x37   : > { %s1944_s19 = scalar_lea.vmem [#allocation9], %s1291_s26 }
  0x38   : > { %1715 = dma.done.wait (%p1895_p11), %s399_s30, 272  }
  0x39   : > { %1717 = vsyncadd (%p1895_p11), %s399_s30, 4294967024  ;;  %p458_p1 = scmp.lt.s32.totalorder %s1736_s27, 1  ;;  %s411_s20 = scalar_lea.vmem [#allocation11], %s1934_s0 }
  0x3a   : > { %p1293_p2 = scmp.ne.s32.totalorder %s1736_s27, 0 }
  0x3b   : > { %s1952_s1 = scalar_select %p458_p1, %s1736_s27, 1 }
  0x3c   : > { %469 = sbr.rel (%p1293_p2) target bundleno = 68 (0x44), region = 72 }
  0x3d   : > { %s460_s16 = scalar_lea.vmem %s2149_s4, %s1952_s1  ;;  %s463_s18 = scalar_lea.vmem %s2150_s5, %s1952_s1 }
  0x41   : > { %v470_v0 = vld [vmem:[#allocation3] sm:$0xff]  ;;  %vm472_vm0 = vcmask 261120   ;;  %v471_v1 = vld [vmem:[#allocation3 + $0x8] sm:$0xff] }
  0x42   : > { %473 = vst.msk [vmem:[#allocation2] sm:$0xff] %vm472_vm0, %v470_v0 }
  0x43   : > { %474 = vst.msk [vmem:[#allocation2 + $0x8] sm:$0xff] %vm472_vm0, %v471_v1 }
  0x44 PF: > { %vm477_vm1 = vcmask 261120   ;;  %v1751_v6 = vmov 32.0   ;;  %v1336_v23 = vld [vmem:[%s1937_s22 + $0x8] sm:$0xff]  ;;  %v1335_v25 = vld [vmem:[%s1937_s22] sm:$0xff]  ;;  %s1752_s15 = smov 72   ;;  %s1753_s24 = smov 120  }
  0x45   : > { %1466 = vrcp.f32 %v1751_v6  ;;  %571 = vmatpush.bf16.msra.mxu0 %v1336_v23  ;;  %v1462_v44 = vld [vmem:[%s463_s18] ss:$0 sm:$0xff]  ;;  %s1754_s8 = smov 96   ;;  %s1755_s23 = smov 112   ;;  %vm583_vm9 = vcmask 64512   ;;  %vm621_vm10 = vcmask 1043456  }
  0x46   : > { %v1463_v49 = vld [vmem:[%s411_s20] ss:$0 sm:$0xff]  ;;  %s1756_s0 = smov 88   ;;  %s1757_s26 = smov 80   ;;  %vm822_vm11 = vcmask 130048   ;;  %vm824_vm12 = vcmask 195584  }
  0x47   : > { %v1464_v54 = vld [vmem:[%s392_s3] ss:$0 sm:$0xff]  ;;  %s1758_s12 = smov 104   ;;  %s1759_s22 = smov 64  }
  0x48   : > { %s1760_s3 = smov 56   ;;  %s1761_s30 = smov 48  }
  0x49   : > { %v1964_v2 = vld [vmem:[#allocation2] sm:$0xff]  ;;  %572 = vmatpush.bf16.msra.mxu0 %v1335_v25  ;;  %s1762_s21 = smov 40   ;;  %s1763_s10 = smov 16  }
  0x4a   : > { %v478_v3 = vsel %vm477_vm1, %v1964_v2, 0.0  ;;  %v1968_v4 = vld [vmem:[#allocation2 + $0x8] sm:$0xff]  ;;  %s1764_s17 = smov 8   ;;  %s1765_s9 = smov 24  }
  0x4b   : > { %479 = vadd.xlane.f32.xlu0 %v478_v3  ;;  %v481_v5 = vsel %vm477_vm1, %v1968_v4, 0.0  ;;  %v1467_v7 = vpop.eup %1466  ;;  %p1328_p3 = scmp.ne.s32.totalorder %s1736_s27, 1 }
  0x4c   : > { %v485_v8 = vmul.f32 32.0, %v1467_v7  ;;  %vm489_vm2 = vweird.f32 %v1467_v7 }
  0x4e   : > { %v486_v9 = vsub.f32 1.0, %v485_v8 }
  0x50   : > { %v487_v10 = vmul.f32 %v1467_v7, %v486_v9 }
  0x52   : > { %v488_v11 = vadd.f32 %v1467_v7, %v487_v10 }
  0x53   : > { %482 = vadd.xlane.f32.xlu0 %v481_v5 }
  0x54   : > { %v490_v12 = vsel %vm489_vm2, %v1467_v7, %v488_v11 }
  0xbe   : > { %v480_v13 = vpop.xlane.xlu0 %479 }
  0xbf   : > { %v491_v14 = vmul.f32 %v490_v12, %v480_v13 }
  0xc1   : > { %v493_v15 = vsub.f32 %v1964_v2, %v491_v14 }
  0xc3   : > { %v495_v16 = vmul.f32 %v493_v15, %v493_v15 }
  0xc5   : > { %v497_v17 = vsel %vm477_vm1, %v495_v16, 0.0 }
  0xc6   : > { %498 = vadd.xlane.f32.xlu1 %v497_v17  ;;  %v483_v18 = vpop.xlane.xlu0 %482 }
  0xc7   : > { %v492_v19 = vmul.f32 %v490_v12, %v483_v18 }
  0xc9   : > { %v494_v20 = vsub.f32 %v1968_v4, %v492_v19 }
  0xcb   : > { %v496_v21 = vmul.f32 %v494_v20, %v494_v20 }
  0xcd   : > { %v500_v22 = vsel %vm477_vm1, %v496_v21, 0.0 }
  0xce   : > { %501 = vadd.xlane.f32.xlu1 %v500_v22 }
 0x139   : > { %v499_v24 = vpop.xlane.xlu1 %498 }
 0x13a   : > { %v503_v26 = vmul.f32 %v499_v24, %v490_v12 }
 0x13c   : > { %v505_v27 = vadd.f32 1e-05, %v503_v26 }
 0x13e   : > { %1468 = vrsqrt.f32 %v505_v27  ;;  %vm513_vm4 = vweird.f32 %v505_v27 }
 0x141   : > { %v502_v28 = vpop.xlane.xlu1 %501 }
 0x142   : > { %v504_v29 = vmul.f32 %v502_v28, %v490_v12 }
 0x144   : > { %v1469_v30 = vpop.eup %1468  ;;  %v506_v31 = vadd.f32 1e-05, %v504_v29 }
 0x145   : > { %v508_v32 = vmul.f32 %v1469_v30, %v505_v27  ;;  %vm514_vm3 = vweird.f32 %v1469_v30 }
 0x146   : > { %1470 = vrsqrt.f32 %v506_v31  ;;  %vm515_vm5 = vmor %vm513_vm4, %vm514_vm3  ;;  %vm523_vm7 = vweird.f32 %v506_v31 }
 0x147   : > { %v509_v33 = vmul.f32 %v1469_v30, %v508_v32 }
 0x149   : > { %v510_v34 = vmul.f32 0.5, %v509_v33 }
 0x14b   : > { %v511_v35 = vsub.f32 1.5, %v510_v34 }
 0x14c   : > { %v1471_v36 = vpop.eup %1470 }
 0x14d   : > { %v512_v37 = vmul.f32 %v1469_v30, %v511_v35  ;;  %v518_v38 = vmul.f32 %v1471_v36, %v506_v31  ;;  %vm524_vm6 = vweird.f32 %v1471_v36 }
 0x14e   : > { %vm525_vm8 = vmor %vm523_vm7, %vm524_vm6 }
 0x14f   : > { %v519_v39 = vmul.f32 %v1471_v36, %v518_v38  ;;  %v516_v40 = vsel %vm515_vm5, %v1469_v30, %v512_v37 }
 0x150   : > { %v527_v43 = vmul.f32 %v516_v40, %v493_v15 }
 0x151   : > { %v520_v41 = vmul.f32 0.5, %v519_v39 }
 0x152   : > { %v533_v48 = vmul.f32 %v1462_v44, %v527_v43 }
 0x153   : > { %v521_v42 = vsub.f32 1.5, %v520_v41 }
 0x154   : > { %v539_v51 = vadd.f32 %v1463_v49, %v533_v48 }
 0x155   : > { %v522_v45 = vmul.f32 %v1471_v36, %v521_v42 }
 0x157   : > { %v526_v46 = vsel %vm525_vm8, %v1471_v36, %v522_v45 }
 0x158   : > { %v528_v47 = vmul.f32 %v526_v46, %v494_v20 }
 0x15a   : > { %v534_v50 = vmul.f32 %v1462_v44, %v528_v47 }
 0x15c   : > { %v540_v52 = vadd.f32 %v1463_v49, %v534_v50 }
 0x15e   : > { %v541_v53 = vpack.c.bf16 %v540_v52, %v539_v51 }
 0x160   : > { %1302 = vmatmul.msk.bf16.vlgmr.msra.gmra.mxu0 %vm477_vm1, %v541_v53 }
 0x1dd   : > { %v574_v55 = vpop.f32.mrf.mxu0 }
 0x1de   : > { %v575_v56 = vadd.f32 %v1464_v54, %v574_v55 }
 0x1e0   : > { %v1988_v57 = vpack.c.bf16 %v575_v56, %v575_v56 }
 0x1e2   : > { %754 = vrot.lane.b32.xlu1 %v1988_v57, %s1752_s15  ;;  %638 = vrot.lane.b32.xlu0 %v1988_v57, %s1753_s24 }
 0x1e3   : > { %581 = vrot.lane.b32.xlu2 %v1988_v57, %s1754_s8 }
 0x1e5   : > { %v576_v58 = vpop.f32.mrf.mxu0 }
 0x1e6   : > { %v577_v59 = vadd.f32 %v1464_v54, %v576_v58 }
 0x1e8   : > { %v1993_v60 = vpack.c.bf16 %v577_v59, %v577_v59 }
 0x1ea   : > { %828 = vrot.lane.b32.xlu1 %v1993_v60, %s1754_s8  ;;  %695 = vrot.lane.b32.xlu0 %v1988_v57, %s1755_s23 }
 0x1eb   : > { %640 = vrot.lane.b32.xlu2 %v1988_v57, %s1756_s0 }
 0x1f2   : > { %942 = vrot.lane.b32.xlu1 %v1993_v60, %s1757_s26  ;;  %999 = vrot.lane.b32.xlu0 %v1993_v60, %s1752_s15 }
 0x1f3   : > { %752 = vrot.lane.b32.xlu2 %v1988_v57, %s1758_s12 }
 0x1fa   : > { %940 = vrot.lane.b32.xlu0 %v1993_v60, %s1755_s23 }
 0x1fb   : > { %697 = vrot.lane.b32.xlu2 %v1988_v57, %s1757_s26 }
 0x203   : > { %885 = vrot.lane.b32.xlu2 %v1993_v60, %s1756_s0 }
 0x20b   : > { %883 = vrot.lane.b32.xlu2 %v1993_v60, %s1753_s24 }
 0x213   : > { %997 = vrot.lane.b32.xlu2 %v1993_v60, %s1758_s12 }
 0x23d   : > { %v582_v61 = vpop.permute.xlu2 %581 }
 0x23e   : > { %v588_v62 = vsel %vm583_vm9, %v582_v61, 0 }
 0x23f   : > { %597 = vmatpush.bf16.xpose.msra.mxu1 %v588_v62 }
 0x245   : > { %v641_v63 = vpop.permute.xlu2 %640 }
 0x246   : > { %1303 = vmatmul.msk.bf16.vlgmr.msra.gmra.mxu1 %vm583_vm9, %v1988_v57  ;;  %v646_v0 = vsel %vm583_vm9, %v641_v63, 0 }
 0x247   : > { %655 = vmatpush.bf16.xpose.msra.mxu3 %v646_v0 }
 0x24d   : > { %v753_v1 = vpop.permute.xlu2 %752 }
 0x254   : > { %v755_v3 = vpop.permute.xlu1 %754  ;;  %v639_v5 = vpop.permute.xlu0 %638 }
 0x255   : > { %v698_v6 = vpop.permute.xlu2 %697  ;;  %1305 = vmatmul.msk.bf16.vlgmr.msra.gmra.mxu3 %vm583_vm9, %v639_v5  ;;  %v760_v7 = vsel %vm583_vm9, %v755_v3, 0 }
 0x256   : > { %v703_v8 = vsel %vm583_vm9, %v698_v6, 0  ;;  %769 = vmatpush.bf16.xpose.msrb.mxu3 %v760_v7 }
 0x257   : > { %712 = vmatpush.bf16.xpose.msrb.mxu0 %v703_v8 }
 0x25c   : > { %v829_v9 = vpop.permute.xlu1 %828  ;;  %v696_v10 = vpop.permute.xlu0 %695 }
 0x25d   : > { %v834_v11 = vsel %vm583_vm9, %v829_v9, 0  ;;  %v886_v12 = vpop.permute.xlu2 %885 }
 0x25e   : > { %v891_v13 = vsel %vm583_vm9, %v886_v12, 0  ;;  %1307 = vmatmul.msk.bf16.vlgmr.msrb.gmra.mxu0 %vm583_vm9, %v696_v10 }
 0x25f   : > { %843 = vmatpush.bf16.xpose.msra.mxu0 %v834_v11  ;;  %900 = vmatpush.bf16.xpose.msra.mxu3 %v891_v13 }
 0x264   : > { %v943_v14 = vpop.permute.xlu1 %942  ;;  %v1000_v15 = vpop.permute.xlu0 %999 }
 0x265   : > { %v948_v16 = vsel %vm583_vm9, %v943_v14, 0  ;;  %v1005_v17 = vsel %vm583_vm9, %v1000_v15, 0  ;;  %1309 = vmatmul.msk.bf16.vlgmr.msrb.gmra.mxu3 %vm583_vm9, %v753_v1  ;;  %v884_v18 = vpop.permute.xlu2 %883 }
 0x267   : > { %957 = vmatpush.bf16.xpose.msrb.mxu0 %v948_v16  ;;  %1014 = vmatpush.bf16.xpose.msrb.mxu3 %v1005_v17 }
 0x26c   : > { %v941_v19 = vpop.permute.xlu0 %940 }
 0x26d   : > { %v998_v20 = vpop.permute.xlu2 %997 }
 0x26e   : > { %1311 = vmatmul.msk.bf16.vlgmr.msra.gmra.mxu0 %vm583_vm9, %v1993_v60 }
 0x275   : > { %1313 = vmatmul.msk.bf16.vlgmr.msra.gmra.mxu3 %vm583_vm9, %v884_v18 }
 0x27e   : > { %1315 = vmatmul.msk.bf16.vlgmr.msrb.gmra.mxu0 %vm583_vm9, %v941_v19 }
 0x285   : > { %1317 = vmatmul.msk.bf16.vlgmr.msrb.gmra.mxu3 %vm583_vm9, %v998_v20 }
 0x2c3   : > { %v599_v21 = vpop.f32.mrf.mxu1 }
 0x2c4   : > { %v603_v22 = vmul.f32 0.35355338, %v599_v21 }
 0x2c6   : > { %v604_v23 = vsel %vm583_vm9, %v603_v22, -inf }
 0x2c7   : > { %605 = vmax.xlane.f32.xlu2 %v604_v23 }
 0x2cb   : > { %v601_v24 = vpop.f32.mrf.mxu1 }
 0x2d8   : > { %v657_v25 = vpop.f32.mrf.mxu3 }
 0x2d9   : > { %v661_v26 = vmul.f32 0.35355338, %v657_v25 }
 0x2db   : > { %v714_v27 = vpop.f32.mrf.mxu0  ;;  %v662_v28 = vsel %vm583_vm9, %v661_v26, -inf }
 0x2dc   : > { %v718_v29 = vmul.f32 0.35355338, %v714_v27  ;;  %663 = vmax.xlane.f32.xlu1 %v662_v28 }
 0x2de   : > { %v719_v30 = vsel %vm583_vm9, %v718_v29, -inf }
 0x2df   : > { %720 = vmax.xlane.f32.xlu2 %v719_v30 }
 0x2e0   : > { %v659_v31 = vpop.f32.mrf.mxu3 }
 0x2e3   : > { %v716_v32 = vpop.f32.mrf.mxu0 }
 0x2e8   : > { %v771_v33 = vpop.f32.mrf.mxu3 }
 0x2e9   : > { %v2027_v34 = vmul.f32 0.35355338, %v771_v33 }
 0x2eb   : > { %v845_v35 = vpop.f32.mrf.mxu0  ;;  %v776_v36 = vsel %vm583_vm9, %v2027_v34, -inf }
 0x2ec   : > { %777 = vmax.xlane.f32.xlu0 %v776_v36  ;;  %v849_v50 = vmul.f32 0.35355338, %v845_v35 }
 0x2ee   : > { %v850_v52 = vsel %vm583_vm9, %v849_v50, -inf }
 0x2f0   : > { %v773_v37 = vpop.f32.mrf.mxu3 }
 0x2f3   : > { %v847_v38 = vpop.f32.mrf.mxu0 }
 0x2f5   : > { %616 = vrot.lane.b32.xlu1 %v1988_v57, %s1759_s22 }
 0x2f7   : > { %674 = vrot.lane.b32.xlu2 %v1988_v57, %s1760_s3 }
 0x2f8   : > { %v902_v39 = vpop.f32.mrf.mxu3 }
 0x2f9   : > { %v906_v49 = vmul.f32 0.35355338, %v902_v39 }
 0x2fb   : > { %v959_v40 = vpop.f32.mrf.mxu0  ;;  %v907_v51 = vsel %vm583_vm9, %v906_v49, -inf }
 0x2fc   : > { %v963_v41 = vmul.f32 0.35355338, %v959_v40 }
 0x2fe   : > { %v964_v42 = vsel %vm583_vm9, %v963_v41, -inf }
 0x2ff   : > { %965 = vmax.xlane.f32.xlu0 %v964_v42 }
 0x300   : > { %v904_v43 = vpop.f32.mrf.mxu3 }
 0x303   : > { %v961_v44 = vpop.f32.mrf.mxu0 }
 0x308   : > { %v1016_v45 = vpop.f32.mrf.mxu3 }
 0x309   : > { %v2036_v46 = vmul.f32 0.35355338, %v1016_v45 }
 0x30b   : > { %v1021_v47 = vsel %vm583_vm9, %v2036_v46, -inf }
 0x30c   : > { %1022 = vmax.xlane.f32.xlu0 %v1021_v47 }
 0x310   : > { %v1018_v48 = vpop.f32.mrf.mxu3 }
 0x31f   : > { %908 = vmax.xlane.f32.xlu1 %v907_v51 }
 0x320   : > { %851 = vmax.xlane.f32.xlu2 %v850_v52 }
 0x338   : > { %731 = vrot.lane.b32.xlu2 %v1988_v57, %s1761_s30 }
 0x33a   : > { %v606_v53 = vpop.xlane.xlu2 %605 }
 0x33b   : > { %v607_v54 = vsub.f32 %v603_v22, %v606_v53 }
 0x33d   : > { %v608_v55 = vmul.f32 1.442695, %v607_v54 }
 0x33f   : > { %1472 = vpow2.f32 %v608_v55 }
 0x345   : > { %v2044_v56 = vpop.eup %1472 }
 0x346   : > { %v610_v58 = vsel %vm583_vm9, %v2044_v56, 0.0 }
 0x347   : > { %611 = vadd.xlane.f32.xlu0 %v610_v58 }
 0x34f   : > { %v664_v59 = vpop.xlane.xlu1 %663 }
 0x350   : > { %v665_v61 = vsub.f32 %v661_v26, %v664_v59 }
 0x352   : > { %v666_v62 = vmul.f32 1.442695, %v665_v61  ;;  %v721_v63 = vpop.xlane.xlu2 %720 }
 0x353   : > { %v722_v0 = vsub.f32 %v718_v29, %v721_v63 }
 0x354   : > { %1474 = vpow2.f32 %v666_v62 }
 0x355   : > { %v723_v1 = vmul.f32 1.442695, %v722_v0 }
 0x357   : > { %1476 = vpow2.f32 %v723_v1 }
 0x35a   : > { %v2050_v3 = vpop.eup %1474  ;;  %v675_v8 = vpop.permute.xlu2 %674 }
 0x35b   : > { %788 = vrot.lane.b32.xlu0 %v1988_v57, %s1762_s21  ;;  %v668_v7 = vsel %vm583_vm9, %v2050_v3, 0.0  ;;  %v680_v57 = vsel %vm621_vm10, %v675_v8, 0 }
 0x35d   : > { %v2052_v5 = vpop.eup %1476 }
 0x35e   : > { %v725_v6 = vsel %vm583_vm9, %v2052_v5, 0.0 }
 0x35f   : > { %726 = vadd.xlane.f32.xlu1 %v725_v6  ;;  %v778_v11 = vpop.xlane.xlu0 %777 }
 0x360   : > { %v779_v20 = vsub.f32 %v2027_v34, %v778_v11 }
 0x361   : > { %669 = vadd.xlane.f32.xlu2 %v668_v7 }
 0x362   : > { %v780_v22 = vmul.f32 1.442695, %v779_v20 }
 0x367   : > { %v617_v9 = vpop.permute.xlu1 %616 }
 0x368   : > { %v623_v10 = vsel %vm621_vm10, %v617_v9, 0 }
 0x369   : > { %632 = vmatpush.bf16.msra.mxu2 %v623_v10 }
 0x36d   : > { %689 = vmatpush.bf16.msrb.mxu2 %v680_v57 }
 0x372   : > { %v966_v12 = vpop.xlane.xlu0 %965 }
 0x373   : > { %v967_v13 = vsub.f32 %v963_v41, %v966_v12 }
 0x375   : > { %v968_v14 = vmul.f32 1.442695, %v967_v13 }
 0x377   : > { %1478 = vpow2.f32 %v968_v14 }
 0x378   : > { %919 = vrot.lane.b32.xlu1 %v1993_v60, %s1760_s3 }
 0x379   : > { %862 = vrot.lane.b32.xlu2 %v1993_v60, %s1759_s22 }
 0x37d   : > { %v2065_v25 = vpop.eup %1478 }
 0x37e   : > { %v970_v32 = vsel %vm583_vm9, %v2065_v25, 0.0 }
 0x37f   : > { %v1023_v23 = vpop.xlane.xlu0 %1022 }
 0x380   : > { %v1024_v29 = vsub.f32 %v2036_v46, %v1023_v23 }
 0x382   : > { %v1025_v33 = vmul.f32 1.442695, %v1024_v29 }
 0x392   : > { %v909_v15 = vpop.xlane.xlu1 %908 }
 0x393   : > { %v910_v16 = vsub.f32 %v906_v49, %v909_v15  ;;  %v852_v17 = vpop.xlane.xlu2 %851 }
 0x394   : > { %v853_v18 = vsub.f32 %v849_v50, %v852_v17 }
 0x395   : > { %v911_v19 = vmul.f32 1.442695, %v910_v16 }
 0x396   : > { %v854_v21 = vmul.f32 1.442695, %v853_v18 }
 0x397   : > { %1480 = vpow2.f32 %v911_v19 }
 0x398   : > { %1482 = vpow2.f32 %v854_v21 }
 0x399   : > { %1484 = vpow2.f32 %v780_v22 }
 0x39a   : > { %1486 = vpow2.f32 %v1025_v33 }
 0x39b   : > { %v732_v24 = vpop.permute.xlu2 %731 }
 0x39c   : > { %v737_v26 = vsel %vm621_vm10, %v732_v24, 0 }
 0x39d   : > { %v2068_v27 = vpop.eup %1480  ;;  %746 = vmatpush.bf16.msrb.mxu1 %v737_v26 }
 0x39e   : > { %v1483_v28 = vpop.eup %1482  ;;  %v913_v31 = vsel %vm583_vm9, %v2068_v27, 0.0 }
 0x39f   : > { %v856_v30 = vsel %vm583_vm9, %v1483_v28, 0.0  ;;  %v1485_v34 = vpop.eup %1484 }
 0x3a0   : > { %857 = vadd.xlane.f32.xlu0 %v856_v30  ;;  %v782_v35 = vsel %vm583_vm9, %v1485_v34, 0.0  ;;  %v2077_v36 = vpop.eup %1486 }
 0x3a1   : > { %v1027_v37 = vsel %vm583_vm9, %v2077_v36, 0.0 }
 0x3a2   : > { %914 = vadd.xlane.f32.xlu2 %v913_v31  ;;  %971 = vadd.xlane.f32.xlu1 %v970_v32 }
 0x3a8   : > { %783 = vadd.xlane.f32.xlu0 %v782_v35 }
 0x3b0   : > { %1028 = vadd.xlane.f32.xlu0 %v1027_v37  ;;  %v1338_v37 = vld [vmem:[%s1944_s19 + $0x8] sm:$0xff] }
 0x3b1   : > { %1099 = vmatpush.bf16.msra.mxu0 %v1338_v37 }
 0x3ba   : > { %976 = vrot.lane.b32.xlu2 %v1993_v60, %s1761_s30  ;;  %v612_v38 = vpop.xlane.xlu0 %611 }
 0x3bb   : > { %1488 = vrcp.f32 %v612_v38  ;;  %v1337_v38 = vld [vmem:[%s1944_s19] sm:$0xff] }
 0x3bc   : > { %1100 = vmatpush.bf16.msra.mxu0 %v1337_v38 }
 0x3c1   : > { %v1489_v39 = vpop.eup %1488 }
 0x3c2   : > { %v614_v40 = vmul.f32 %v1489_v39, %v2044_v56 }
 0x3c4   : > { %1033 = vrot.lane.b32.xlu0 %v1993_v60, %s1762_s21  ;;  %v615_v41 = vpack.c.bf16 %v614_v40, %v614_v40 }
 0x3c6   : > { %1304 = vmatmul.msk.bf16.vlgmr.msra.gmra.mxu2 %vm583_vm9, %v615_v41 }
 0x3cd   : > { %v789_v42 = vpop.permute.xlu0 %788 }
 0x3ce   : > { %v794_v43 = vsel %vm621_vm10, %v789_v42, 0 }
 0x3cf   : > { %803 = vmatpush.bf16.msra.mxu2 %v794_v43 }
 0x3d2   : > { %v727_v44 = vpop.xlane.xlu1 %726 }
 0x3d3   : > { %1490 = vrcp.f32 %v727_v44 }
 0x3d4   : > { %v670_v45 = vpop.xlane.xlu2 %669 }
 0x3d5   : > { %1492 = vrcp.f32 %v670_v45 }
 0x3d9   : > { %v1491_v46 = vpop.eup %1490 }
 0x3da   : > { %v729_v47 = vmul.f32 %v1491_v46, %v2052_v5 }
 0x3db   : > { %v1493_v48 = vpop.eup %1492 }
 0x3dc   : > { %v672_v49 = vmul.f32 %v1493_v48, %v2050_v3  ;;  %v863_v50 = vpop.permute.xlu2 %862  ;;  %v730_v51 = vpack.c.bf16 %v729_v47, %v729_v47 }
 0x3dd   : > { %v868_v60 = vsel %vm621_vm10, %v863_v50, 0 }
 0x3de   : > { %1308 = vmatmul.msk.bf16.vlgmr.msrb.gmra.mxu1 %vm583_vm9, %v730_v51  ;;  %v673_v52 = vpack.c.bf16 %v672_v49, %v672_v49 }
 0x3df   : > { %877 = vmatpush.bf16.msra.mxu1 %v868_v60 }
 0x3e0   : > { %1306 = vmatmul.msk.bf16.vlgmr.msrb.gmra.mxu2 %vm583_vm9, %v673_v52 }
 0x3ea   : > { %v920_v53 = vpop.permute.xlu1 %919 }
 0x3eb   : > { %v925_v54 = vsel %vm621_vm10, %v920_v53, 0 }
 0x3ec   : > { %934 = vmatpush.bf16.msrb.mxu2 %v925_v54  ;;  %v1465_v54 = vld [vmem:[%s460_s16] ss:$0 sm:$0xff] }
 0x413   : > { %v858_v55 = vpop.xlane.xlu0 %857 }
 0x414   : > { %1494 = vrcp.f32 %v858_v55 }
 0x415   : > { %v915_v56 = vpop.xlane.xlu2 %914  ;;  %v972_v63 = vpop.xlane.xlu1 %971 }
 0x41a   : > { %v1495_v58 = vpop.eup %1494 }
 0x41b   : > { %v860_v59 = vmul.f32 %v1495_v58, %v1483_v28  ;;  %v784_v61 = vpop.xlane.xlu0 %783 }
 0x41c   : > { %1496 = vrcp.f32 %v784_v61 }
 0x41d   : > { %v861_v62 = vpack.c.bf16 %v860_v59, %v860_v59  ;;  %v977_v0 = vpop.permute.xlu2 %976  ;;  %1498 = vrcp.f32 %v972_v63 }
 0x41e   : > { %v982_v1 = vsel %vm621_vm10, %v977_v0, 0  ;;  %1500 = vrcp.f32 %v915_v56 }
 0x41f   : > { %1312 = vmatmul.msk.bf16.vlgmr.msra.gmra.mxu1 %vm583_vm9, %v861_v62 }
 0x420   : > { %991 = vmatpush.bf16.msrb.mxu1 %v982_v1 }
 0x422   : > { %v1497_v3 = vpop.eup %1496 }
 0x423   : > { %v786_v5 = vmul.f32 %v1497_v3, %v1485_v34  ;;  %v1499_v7 = vpop.eup %1498  ;;  %v1029_v57 = vpop.xlane.xlu0 %1028 }
 0x424   : > { %v974_v8 = vmul.f32 %v1499_v7, %v2065_v25  ;;  %v1501_v10 = vpop.eup %1500  ;;  %1502 = vrcp.f32 %v1029_v57 }
 0x425   : > { %v787_v6 = vpack.c.bf16 %v786_v5, %v786_v5  ;;  %v917_v11 = vmul.f32 %v1501_v10, %v2068_v27 }
 0x426   : > { %v975_v9 = vpack.c.bf16 %v974_v8, %v974_v8 }
 0x427   : > { %1310 = vmatmul.msk.bf16.vlgmr.msra.gmra.mxu2 %vm583_vm9, %v787_v6  ;;  %v918_v12 = vpack.c.bf16 %v917_v11, %v917_v11 }
 0x42a   : > { %v1503_v15 = vpop.eup %1502 }
 0x42b   : > { %v1031_v16 = vmul.f32 %v1503_v15, %v2077_v36 }
 0x42d   : > { %v1032_v17 = vpack.c.bf16 %v1031_v16, %v1031_v16 }
 0x42f   : > { %1316 = vmatmul.msk.bf16.vlgmr.msrb.gmra.mxu1 %vm583_vm9, %v975_v9 }
 0x436   : > { %v1034_v13 = vpop.permute.xlu0 %1033 }
 0x437   : > { %v1039_v14 = vsel %vm621_vm10, %v1034_v13, 0  ;;  %1314 = vmatmul.msk.bf16.vlgmr.msrb.gmra.mxu2 %vm583_vm9, %v918_v12 }
 0x438   : > { %1048 = vmatpush.bf16.msra.mxu2 %v1039_v14 }
 0x447   : > { %1318 = vmatmul.msk.bf16.vlgmr.msra.gmra.mxu2 %vm583_vm9, %v1032_v17 }
 0x449   : > { %v634_v18 = vpop.f32.mrf.mxu2 }
 0x451   : > { %v636_v19 = vpop.f32.mrf.mxu2 }
 0x45b   : > { %v748_v20 = vpop.f32.mrf.mxu1 }
 0x463   : > { %v691_v21 = vpop.f32.mrf.mxu2  ;;  %v750_v22 = vpop.f32.mrf.mxu1 }
 0x46b   : > { %v693_v23 = vpop.f32.mrf.mxu2 }
 0x49c   : > { %v879_v24 = vpop.f32.mrf.mxu1 }
 0x4a4   : > { %v881_v25 = vpop.f32.mrf.mxu1 }
 0x4aa   : > { %v805_v26 = vpop.f32.mrf.mxu2 }
 0x4ac   : > { %v993_v27 = vpop.f32.mrf.mxu1 }
 0x4ad   : > { %v1452_v28 = vpack.i.bf16 %v993_v27, %v748_v20 }
 0x4af   : > { %1453 = vrot.lane.b32.xlu2 %v1452_v28, %s1763_s10 }
 0x4b2   : > { %v807_v29 = vpop.f32.mrf.mxu2 }
 0x4b4   : > { %v995_v30 = vpop.f32.mrf.mxu1 }
 0x4ba   : > { %v936_v31 = vpop.f32.mrf.mxu2 }
 0x4bb   : > { %v1447_v32 = vpack.i.bf16 %v936_v31, %v691_v21 }
 0x4bd   : > { %1448 = vrot.lane.b32.xlu0 %v1447_v32, %s1764_s17 }
 0x4c2   : > { %v938_v33 = vpop.f32.mrf.mxu2 }
 0x4ca   : > { %v1050_v34 = vpop.f32.mrf.mxu2 }
 0x4cb   : > { %v1457_v35 = vpack.i.bf16 %v1050_v34, %v805_v26 }
 0x4cd   : > { %1458 = vrot.lane.b32.xlu0 %v1457_v35, %s1765_s9 }
 0x4d2   : > { %v1052_v36 = vpop.f32.mrf.mxu2 }
 0x509   : > { %v1454_v42 = vpop.permute.xlu2 %1453 }
 0x50a   : > { %v1456_v45 = vunpack.i.h.bf16 %v1454_v42  ;;  %v1455_v46 = vunpack.i.l.bf16 %v1454_v42 }
 0x52f   : > { %v1449_v39 = vpop.permute.xlu0 %1448 }
 0x530   : > { %v1451_v40 = vunpack.i.h.bf16 %v1449_v39  ;;  %v1450_v41 = vunpack.i.l.bf16 %v1449_v39 }
 0x532   : > { %v1066_v43 = vsel %vm583_vm9, %v879_v24, %v1451_v40  ;;  %v821_v44 = vsel %vm583_vm9, %v634_v18, %v1450_v41 }
 0x533   : > { %v823_v50 = vsel %vm822_vm11, %v821_v44, %v1455_v46  ;;  %v1067_v51 = vsel %vm822_vm11, %v1066_v43, %v1456_v45 }
 0x53f   : > { %v1459_v47 = vpop.permute.xlu0 %1458 }
 0x540   : > { %v1461_v48 = vunpack.i.h.bf16 %v1459_v47  ;;  %v1460_v49 = vunpack.i.l.bf16 %v1459_v47 }
 0x542   : > { %v825_v60 = vsel %vm824_vm12, %v823_v50, %v1460_v49  ;;  %v1068_v52 = vsel %vm824_vm12, %v1067_v51, %v1461_v48 }
 0x543   : > { %v1069_v53 = vpack.c.bf16 %v1068_v52, %v825_v60 }
 0x545   : > { %1327 = vmatmul.msk.bf16.vlgmr.msra.gmra.mxu0 %vm477_vm1, %v1069_v53 }
 0x5c2   : > { %v1102_v55 = vpop.f32.mrf.mxu0 }
 0x5c3   : > { %v1103_v56 = vadd.f32 %v1465_v54, %v1102_v55 }
 0x5c5   : > { %v1107_v58 = vadd.f32 %v1103_v56, %v1964_v2 }
 0x5c7   : > { %1109 = vst.msk [vmem:[#allocation2] sm:$0xff] %vm477_vm1, %v1107_v58 }
 0x5ca   : > { %v1104_v59 = vpop.f32.mrf.mxu0 }
 0x5cb   : > { %v1105_v61 = vadd.f32 %v1465_v54, %v1104_v59  ;;  %1114 = sbr.rel (%p1328_p3) target bundleno = 1490 (0x5d2), region = 76 }
 0x5cd   : > { %v1108_v62 = vadd.f32 %v1105_v61, %v1968_v4 }
 0x5cf   : > { %1110 = vst.msk [vmem:[#allocation2 + $0x8] sm:$0xff] %vm477_vm1, %v1108_v62 }
 0x5d0   : > { %1115 = vst.msk [vmem:[#allocation12] sm:$0xff] %vm477_vm1, %v1107_v58 }
 0x5d1   : > { %1116 = vst.msk [vmem:[#allocation12 + $0x8] sm:$0xff] %vm477_vm1, %v1108_v62 }
 0x5d2 PF: > { %p1375_p4 = scmp.eq.s32.totalorder %s1886_s14, 1  ;;  %s1127_s20 = sshll.u32 %s2152_s7, 4  ;;  %s1128_s20 = int_to_ptr.hbm [resolvable:$true] %s1127_s20 }
 0x5d3   : > { %s1766_s13 = smov [#allocation12]   ;;  %s1767_s15 = smov 128  }
 0x5d4   : > { %s1125_s11 = sshll.u32 %s1766_s13, 4  ;;  %s1126_s11 = int_to_ptr.vmem [resolvable:$true] %s1125_s11 }
 0x5d5   : > { %1352 = dma.vmem_to_hbm [thread:$0]  (%p1375_p4), %s1126_s11, 256, %s1128_s20, [#allocation5], %s1767_s15, %s1767_s15, %s1764_s17  }
 0x5d6   : > { %1719 = dma.done.wait (%p1375_p4), [#allocation5], 256  }
 0x5d7   : > { %1721 = vsyncadd (%p1375_p4), [#allocation5], 4294967040 }
 0x5d8 PF: > { %s25_s29 = sadd.s32 1, %s1744_s29   ;;  %s2168_s27 = sld [smem:[#allocation17_spill]] }
 0x5d9   : > { %p22_p5 = scmp.ge.s32.totalorder %s25_s29, 4   ;;  %s2169_s26 = sld [smem:[#allocation19_spill]] }
 0x5da   : > { %s2170_s14 = sld [smem:[#allocation18_spill]]  ;;  %s2171_s24 = smov %s1728_s25 }
 0x5dc   :  { %24 = sbr.rel (!%p22_p5) target bundleno = 12 (0xc), region = 141 }
 0x5de   : > { %s2172_s25 = smov %s2168_s27  ;;  %s2173_s27 = smov %s1740_s28 }
 0x5e0   : > { %s2174_s28 = smov %s2170_s14 }
 0x5e1   :  { %1144 = vsyncpa [#allocation4], 1 }
 0x5e2   :  { %1146 = vsyncpa [#allocation4 + $0x1], 1 }
 0x5e3   :  { %1147 = vsyncpa [#allocation7], 1 }
 0x5e4   :  { %1149 = vsyncpa [#allocation7 + $0x1], 1 }
 0x5e5   :  { %1150 = vsyncpa [#allocation10], 1 }
 0x5e6   :  { %1152 = vsyncpa [#allocation10 + $0x1], 1 }
 0x5e7   :  { %1153 = vsyncpa [#allocation5], 1 }
 0x5e8   :  { %1155 = vsyncpa [#allocation5 + $0x1], 1 }

</bundles_post_ra>
